<compile_context>
chip_gen: v6e
topology: v6e:2x2x1
jax: 0.10.0
libtpu: 0.0.40
codegen_flags: <defaults>
</compile_context>

<pallas_src>
import jax
import jax.numpy as jnp
from jax.experimental import pallas as pl
from jax.experimental.pallas import tpu as pltpu

# Problem dimensions implied by the module (args.dsensory / dinst / daction, hidden 64/32/10).
DSENS, DINST, DACT = 16, 8, 8
H1, H2, DOUT = 64, 32, 10


def _round_up(n, m):
    return ((n + m - 1) // m) * m


def fcbase_kernel(s_ref, i_ref, a_ref,
                  w1s_ref, w1i_ref, w1a_ref, b1_ref,
                  w2_ref, b2_ref, w3_ref, b3_ref,
                  o_ref):
    """One batch tile of the fused forward pass. Activations/weights are bf16 on the MXU,
    accumulation and elementwise math are f32."""
    s = s_ref[...]          # (TB, DSENS)  bf16
    ins = i_ref[...]        # (TB, DINST)  bf16
    act = a_ref[...]        # (TB, DACT)   bf16

    # Fused torch.cat([...], dim=1) @ W1: split W1 row-wise and sum partial products.
    h1 = (jnp.dot(s,   w1s_ref[...], preferred_element_type=jnp.float32)
          + jnp.dot(ins, w1i_ref[...], preferred_element_type=jnp.float32)
          + jnp.dot(act, w1a_ref[...], preferred_element_type=jnp.float32)
          + b1_ref[...])
    h1 = jnp.maximum(h1, 0.0).astype(jnp.bfloat16)          # ReLU (f32) -> bf16 for MXU

    h2 = jnp.dot(h1, w2_ref[...], preferred_element_type=jnp.float32) + b2_ref[...]
    h2 = jnp.maximum(h2, 0.0).astype(jnp.bfloat16)           # ReLU (f32) -> bf16 for MXU

    h3 = jnp.dot(h2, w3_ref[...], preferred_element_type=jnp.float32) + b3_ref[...]

    # Sigmoid: exp on the EUP, reciprocal on the EUP (approx) — no VPU divide.
    o_ref[...] = pl.reciprocal(1.0 + jnp.exp(-h3), approx=True)


def prepare_params(params):
    """Split fc1's weight by input stream and cast weights to bf16; biases stay f32."""
    w1, b1, w2, b2, w3, b3 = params
    w1s = w1[:DSENS].astype(jnp.bfloat16)
    w1i = w1[DSENS:DSENS + DINST].astype(jnp.bfloat16)
    w1a = w1[DSENS + DINST:].astype(jnp.bfloat16)
    return (w1s, w1i, w1a, b1,
            w2.astype(jnp.bfloat16), b2,
            w3.astype(jnp.bfloat16), b3)


def fcbase_forward(sensory, instructions, prev_actions, params, *, block_b=128):
    """sensory (B, 16), instructions (B, 8), prev_actions (B, 8) -> (B, 10) f32."""
    B = sensory.shape[0]
    w1s, w1i, w1a, b1, w2, b2, w3, b3 = prepare_params(params)

    # Batch tile: multiple of 8 (sublane), capped by block_b; pad batch to a multiple of it.
    tb = min(block_b, _round_up(B, 8))
    Bp = _round_up(B, tb)
    grid = (Bp // tb,)

    def pad_cast(t):
        if t.shape[0] != Bp:
            t = jnp.pad(t, ((0, Bp - t.shape[0]), (0, 0)))
        return t.astype(jnp.bfloat16)

    s = pad_cast(sensory)
    i = pad_cast(instructions)
    a = pad_cast(prev_actions)

    # Batch-tiled input streams; constant-index (VMEM-resident) weights/biases.
    tiled = lambda d: pl.BlockSpec((tb, d), lambda b: (b, 0))
    resident = lambda t: pl.BlockSpec(t.shape, lambda b: (0, 0))

    out = pl.pallas_call(
        fcbase_kernel,
        out_shape=jax.ShapeDtypeStruct((Bp, DOUT), jnp.float32),
        grid=grid,
        in_specs=[
            tiled(DSENS), tiled(DINST), tiled(DACT),
            resident(w1s), resident(w1i), resident(w1a), resident(b1),
            resident(w2), resident(b2), resident(w3), resident(b3),
        ],
        out_specs=pl.BlockSpec((tb, DOUT), lambda b: (b, 0)),
        compiler_params=pltpu.CompilerParams(
            dimension_semantics=("parallel",)),   # shard batch tiles across v7x's 2 TCs
    )(s, i, a, w1s, w1i, w1a, b1, w2, b2, w3, b3)

    return out[:B] if Bp != B else out


def init_params(key):
    """Deterministic init matching nn.Linear shapes (stored as (in, out)), f32 master copy."""
    ks = jax.random.split(key, 6)

    def lin(kw, kb, fan_in, fan_out):
        bound = 1.0 / jnp.sqrt(fan_in)
        w = jax.random.uniform(kw, (fan_in, fan_out), jnp.float32, -bound, bound)
        b = jax.random.uniform(kb, (1, fan_out), jnp.float32, -bound, bound)
        return w, b

    din = DSENS + DINST + DACT
    w1, b1 = lin(ks[0], ks[1], din, H1)
    w2, b2 = lin(ks[2], ks[3], H1, H2)
    w3, b3 = lin(ks[4], ks[5], H2, DOUT)
    return (w1, b1, w2, b2, w3, b3)


if __name__ == "__main__":
    # Small but tiled demo: B=256 with block_b=128 -> grid of 2 batch tiles.
    B = 256
    key = jax.random.PRNGKey(0)
    k_s, k_i, k_a, k_p = jax.random.split(key, 4)

    sensory = jax.random.normal(k_s, (B, DSENS), jnp.float32)
    instructions = jax.random.normal(k_i, (B, DINST), jnp.float32)
    prev_actions = jax.random.normal(k_a, (B, DACT), jnp.float32)

    params = init_params(k_p)

    out = fcbase_forward(sensory, instructions, prev_actions, params, block_b=128)
    out = jax.block_until_ready(out)
    assert out.shape == (B, DOUT) and out.dtype == jnp.float32

    # Reference in plain JAX with matching bf16 matmul inputs / f32 accumulation.
    w1, b1, w2, b2, w3, b3 = params
    x = jnp.concatenate([sensory, instructions, prev_actions], axis=1).astype(jnp.bfloat16)
    h = jnp.dot(x, w1.astype(jnp.bfloat16), preferred_element_type=jnp.float32) + b1
    h = jnp.maximum(h, 0.0).astype(jnp.bfloat16)
    h = jnp.dot(h, w2.astype(jnp.bfloat16), preferred_element_type=jnp.float32) + b2
    h = jnp.maximum(h, 0.0).astype(jnp.bfloat16)
    ref = jax.nn.sigmoid(
        jnp.dot(h, w3.astype(jnp.bfloat16), preferred_element_type=jnp.float32) + b3)

    # Tolerance covers the approximate EUP reciprocal in the sigmoid epilogue.
    assert jnp.allclose(out, ref, atol=1e-2, rtol=1e-2), "mismatch vs reference"

    print("KERNEL_OK")
</pallas_src>

<mosaic_0001>
module attributes {stable_mosaic.version = 11 : i64} {
  func.func @fcbase_kernel(%arg0: i32, %arg1: memref<128x16xbf16, #tpu.memory_space<vmem>>, %arg2: memref<128x8xbf16, #tpu.memory_space<vmem>>, %arg3: memref<128x8xbf16, #tpu.memory_space<vmem>>, %arg4: memref<16x64xbf16, #tpu.memory_space<vmem>>, %arg5: memref<8x64xbf16, #tpu.memory_space<vmem>>, %arg6: memref<8x64xbf16, #tpu.memory_space<vmem>>, %arg7: memref<1x64xf32, #tpu.memory_space<vmem>>, %arg8: memref<64x32xbf16, #tpu.memory_space<vmem>>, %arg9: memref<1x32xf32, #tpu.memory_space<vmem>>, %arg10: memref<32x10xbf16, #tpu.memory_space<vmem>>, %arg11: memref<1x10xf32, #tpu.memory_space<vmem>>, %arg12: memref<128x10xf32, #tpu.memory_space<vmem>>) attributes {dimension_semantics = [#tpu.dimension_semantics<parallel>], iteration_bounds = array<i64: 2>, scalar_prefetch = 0 : i64, scratch_operands = 0 : i64, tpu.core_type = #tpu.core_type<tc>, window_params = [{transform_indices = @transform_0, window_bounds = array<i64: 128, 16>}, {transform_indices = @transform_1, window_bounds = array<i64: 128, 8>}, {transform_indices = @transform_2, window_bounds = array<i64: 128, 8>}, {pipeline_mode = #tpu.pipeline_mode<synchronous>, transform_indices = @transform_3, window_bounds = array<i64: 16, 64>}, {pipeline_mode = #tpu.pipeline_mode<synchronous>, transform_indices = @transform_4, window_bounds = array<i64: 8, 64>}, {pipeline_mode = #tpu.pipeline_mode<synchronous>, transform_indices = @transform_5, window_bounds = array<i64: 8, 64>}, {pipeline_mode = #tpu.pipeline_mode<synchronous>, transform_indices = @transform_6, window_bounds = array<i64: 1, 64>}, {pipeline_mode = #tpu.pipeline_mode<synchronous>, transform_indices = @transform_7, window_bounds = array<i64: 64, 32>}, {pipeline_mode = #tpu.pipeline_mode<synchronous>, transform_indices = @transform_8, window_bounds = array<i64: 1, 32>}, {pipeline_mode = #tpu.pipeline_mode<synchronous>, transform_indices = @transform_9, window_bounds = array<i64: 32, 10>}, {pipeline_mode = #tpu.pipeline_mode<synchronous>, transform_indices = @transform_10, window_bounds = array<i64: 1, 10>}, {transform_indices = @transform_11, window_bounds = array<i64: 128, 10>}]} {
    %c0 = arith.constant 0 : index
    %c0_0 = arith.constant 0 : index
    %0 = vector.load %arg1[%c0, %c0_0] : memref<128x16xbf16, #tpu.memory_space<vmem>>, vector<128x16xbf16>
    %c0_1 = arith.constant 0 : index
    %c0_2 = arith.constant 0 : index
    %1 = vector.load %arg2[%c0_1, %c0_2] : memref<128x8xbf16, #tpu.memory_space<vmem>>, vector<128x8xbf16>
    %c0_3 = arith.constant 0 : index
    %c0_4 = arith.constant 0 : index
    %2 = vector.load %arg3[%c0_3, %c0_4] : memref<128x8xbf16, #tpu.memory_space<vmem>>, vector<128x8xbf16>
    %c0_5 = arith.constant 0 : index
    %c0_6 = arith.constant 0 : index
    %3 = vector.load %arg4[%c0_5, %c0_6] : memref<16x64xbf16, #tpu.memory_space<vmem>>, vector<16x64xbf16>
    %cst = arith.constant dense<0.000000e+00> : vector<128x64xf32>
    %4 = tpu.matmul %0, %3, %cst {dimension_numbers = #tpu.dot_dimension_numbers<[1], [0], [0], [1], [0, 0, 1, 1], [], []>} : vector<128x16xbf16>, vector<16x64xbf16>, vector<128x64xf32> -> vector<128x64xf32>
    %c0_7 = arith.constant 0 : index
    %c0_8 = arith.constant 0 : index
    %5 = vector.load %arg5[%c0_7, %c0_8] : memref<8x64xbf16, #tpu.memory_space<vmem>>, vector<8x64xbf16>
    %cst_9 = arith.constant dense<0.000000e+00> : vector<128x64xf32>
    %6 = tpu.matmul %1, %5, %cst_9 {dimension_numbers = #tpu.dot_dimension_numbers<[1], [0], [0], [1], [0, 0, 1, 1], [], []>} : vector<128x8xbf16>, vector<8x64xbf16>, vector<128x64xf32> -> vector<128x64xf32>
    %7 = arith.addf %4, %6 : vector<128x64xf32>
    %c0_10 = arith.constant 0 : index
    %c0_11 = arith.constant 0 : index
    %8 = vector.load %arg6[%c0_10, %c0_11] : memref<8x64xbf16, #tpu.memory_space<vmem>>, vector<8x64xbf16>
    %cst_12 = arith.constant dense<0.000000e+00> : vector<128x64xf32>
    %9 = tpu.matmul %2, %8, %cst_12 {dimension_numbers = #tpu.dot_dimension_numbers<[1], [0], [0], [1], [0, 0, 1, 1], [], []>} : vector<128x8xbf16>, vector<8x64xbf16>, vector<128x64xf32> -> vector<128x64xf32>
    %10 = arith.addf %7, %9 : vector<128x64xf32>
    %c0_13 = arith.constant 0 : index
    %c0_14 = arith.constant 0 : index
    %11 = vector.load %arg7[%c0_13, %c0_14] : memref<1x64xf32, #tpu.memory_space<vmem>>, vector<1x64xf32>
    %12 = vector.broadcast %11 : vector<1x64xf32> to vector<128x64xf32>
    %13 = arith.addf %10, %12 : vector<128x64xf32>
    %cst_15 = arith.constant 0.000000e+00 : f32
    %14 = vector.broadcast %cst_15 : f32 to vector<128x64xf32>
    %15 = arith.maximumf %13, %14 : vector<128x64xf32>
    %16 = arith.truncf %15 : vector<128x64xf32> to vector<128x64xbf16>
    %c0_16 = arith.constant 0 : index
    %c0_17 = arith.constant 0 : index
    %17 = vector.load %arg8[%c0_16, %c0_17] : memref<64x32xbf16, #tpu.memory_space<vmem>>, vector<64x32xbf16>
    %cst_18 = arith.constant dense<0.000000e+00> : vector<128x32xf32>
    %18 = tpu.matmul %16, %17, %cst_18 {dimension_numbers = #tpu.dot_dimension_numbers<[1], [0], [0], [1], [0, 0, 1, 1], [], []>} : vector<128x64xbf16>, vector<64x32xbf16>, vector<128x32xf32> -> vector<128x32xf32>
    %c0_19 = arith.constant 0 : index
    %c0_20 = arith.constant 0 : index
    %19 = vector.load %arg9[%c0_19, %c0_20] : memref<1x32xf32, #tpu.memory_space<vmem>>, vector<1x32xf32>
    %20 = vector.broadcast %19 : vector<1x32xf32> to vector<128x32xf32>
    %21 = arith.addf %18, %20 : vector<128x32xf32>
    %cst_21 = arith.constant 0.000000e+00 : f32
    %22 = vector.broadcast %cst_21 : f32 to vector<128x32xf32>
    %23 = arith.maximumf %21, %22 : vector<128x32xf32>
    %24 = arith.truncf %23 : vector<128x32xf32> to vector<128x32xbf16>
    %c0_22 = arith.constant 0 : index
    %c0_23 = arith.constant 0 : index
    %25 = vector.load %arg10[%c0_22, %c0_23] : memref<32x10xbf16, #tpu.memory_space<vmem>>, vector<32x10xbf16>
    %cst_24 = arith.constant dense<0.000000e+00> : vector<128x10xf32>
    %26 = tpu.matmul %24, %25, %cst_24 {dimension_numbers = #tpu.dot_dimension_numbers<[1], [0], [0], [1], [0, 0, 1, 1], [], []>} : vector<128x32xbf16>, vector<32x10xbf16>, vector<128x10xf32> -> vector<128x10xf32>
    %c0_25 = arith.constant 0 : index
    %c0_26 = arith.constant 0 : index
    %27 = vector.load %arg11[%c0_25, %c0_26] : memref<1x10xf32, #tpu.memory_space<vmem>>, vector<1x10xf32>
    %28 = vector.broadcast %27 : vector<1x10xf32> to vector<128x10xf32>
    %29 = arith.addf %26, %28 : vector<128x10xf32>
    %cst_27 = arith.constant 0.000000e+00 : f32
    %30 = vector.broadcast %cst_27 : f32 to vector<128x10xf32>
    %31 = arith.subf %30, %29 : vector<128x10xf32>
    %32 = math.exp %31 : vector<128x10xf32>
    %cst_28 = arith.constant 1.000000e+00 : f32
    %33 = vector.broadcast %cst_28 : f32 to vector<128x10xf32>
    %34 = arith.addf %33, %32 : vector<128x10xf32>
    %35 = tpu.reciprocal %34 {approx = true} : vector<128x10xf32> -> vector<128x10xf32>
    %c0_29 = arith.constant 0 : index
    %c0_30 = arith.constant 0 : index
    %36 = vector.load %arg12[%c0_29, %c0_30] : memref<128x10xf32, #tpu.memory_space<vmem>>, vector<128x10xf32>
    tpu.vector_store %arg12[%c0_29, %c0_30], %35 {strides = array<i32>} : memref<128x10xf32, #tpu.memory_space<vmem>>, vector<128x10xf32>,
    return
  }
  func.func @transform_0(%arg0: i32) -> (i32, i32) {
    %c0_i32 = arith.constant 0 : i32
    %c0_i32_0 = arith.constant 0 : i32
    return %arg0, %c0_i32 : i32, i32
  }
  func.func @transform_1(%arg0: i32) -> (i32, i32) {
    %c0_i32 = arith.constant 0 : i32
    %c0_i32_0 = arith.constant 0 : i32
    return %arg0, %c0_i32 : i32, i32
  }
  func.func @transform_2(%arg0: i32) -> (i32, i32) {
    %c0_i32 = arith.constant 0 : i32
    %c0_i32_0 = arith.constant 0 : i32
    return %arg0, %c0_i32 : i32, i32
  }
  func.func @transform_3(%arg0: i32) -> (i32, i32) {
    %c0_i32 = arith.constant 0 : i32
    %c0_i32_0 = arith.constant 0 : i32
    %c0_i32_1 = arith.constant 0 : i32
    return %c0_i32, %c0_i32_0 : i32, i32
  }
  func.func @transform_4(%arg0: i32) -> (i32, i32) {
    %c0_i32 = arith.constant 0 : i32
    %c0_i32_0 = arith.constant 0 : i32
    %c0_i32_1 = arith.constant 0 : i32
    return %c0_i32, %c0_i32_0 : i32, i32
  }
  func.func @transform_5(%arg0: i32) -> (i32, i32) {
    %c0_i32 = arith.constant 0 : i32
    %c0_i32_0 = arith.constant 0 : i32
    %c0_i32_1 = arith.constant 0 : i32
    return %c0_i32, %c0_i32_0 : i32, i32
  }
  func.func @transform_6(%arg0: i32) -> (i32, i32) {
    %c0_i32 = arith.constant 0 : i32
    %c0_i32_0 = arith.constant 0 : i32
    %c0_i32_1 = arith.constant 0 : i32
    return %c0_i32, %c0_i32_0 : i32, i32
  }
  func.func @transform_7(%arg0: i32) -> (i32, i32) {
    %c0_i32 = arith.constant 0 : i32
    %c0_i32_0 = arith.constant 0 : i32
    %c0_i32_1 = arith.constant 0 : i32
    return %c0_i32, %c0_i32_0 : i32, i32
  }
  func.func @transform_8(%arg0: i32) -> (i32, i32) {
    %c0_i32 = arith.constant 0 : i32
    %c0_i32_0 = arith.constant 0 : i32
    %c0_i32_1 = arith.constant 0 : i32
    return %c0_i32, %c0_i32_0 : i32, i32
  }
  func.func @transform_9(%arg0: i32) -> (i32, i32) {
    %c0_i32 = arith.constant 0 : i32
    %c0_i32_0 = arith.constant 0 : i32
    %c0_i32_1 = arith.constant 0 : i32
    return %c0_i32, %c0_i32_0 : i32, i32
  }
  func.func @transform_10(%arg0: i32) -> (i32, i32) {
    %c0_i32 = arith.constant 0 : i32
    %c0_i32_0 = arith.constant 0 : i32
    %c0_i32_1 = arith.constant 0 : i32
    return %c0_i32, %c0_i32_0 : i32, i32
  }
  func.func @transform_11(%arg0: i32) -> (i32, i32) {
    %c0_i32 = arith.constant 0 : i32
    %c0_i32_0 = arith.constant 0 : i32
    return %arg0, %c0_i32 : i32, i32
  }
}

</mosaic_0001>

<bundles_post_ra>
// kernel: tpu_custom_call.1
= control target key start
LH: loop header
LB: loop body
LE: loop exit
PB: predicated region body
PF: predicated region fallthrough
CT: control target
= control target key end

     0   :  { %s1967_s17 = smov 0   ;;  %s2189_s0 = inlined_call_operand.vmem [shape: bf16[256,16], index: 0, kind: input, shape index: {}]   ;;  %s2190_s1 = inlined_call_operand.vmem [shape: bf16[256,8], index: 1, kind: input, shape index: {}]   ;;  %s2191_s2 = inlined_call_operand.vmem [shape: bf16[256,8], index: 2, kind: input, shape index: {}]   ;;  %s2192_s3 = inlined_call_operand.vmem [shape: bf16[16,64], index: 3, kind: input, shape index: {}]   ;;  %s2193_s4 = inlined_call_operand.vmem [shape: bf16[8,64], index: 4, kind: input, shape index: {}]   ;;  %s2194_s5 = inlined_call_operand.vmem [shape: bf16[8,64], index: 5, kind: input, shape index: {}]   ;;  %s2195_s6 = inlined_call_operand.vmem [shape: f32[1,64], index: 6, kind: input, shape index: {}]   ;;  %s2196_s7 = inlined_call_operand.vmem [shape: bf16[64,32], index: 7, kind: input, shape index: {}]   ;;  %s2197_s8 = inlined_call_operand.vmem [shape: f32[1,32], index: 8, kind: input, shape index: {}]   ;;  %s2198_s9 = inlined_call_operand.vmem [shape: bf16[32,10], index: 9, kind: input, shape index: {}]   ;;  %s2199_s10 = inlined_call_operand.vmem [shape: f32[1,10], index: 10, kind: input, shape index: {}]   ;;  %s2200_s11 = inlined_call_operand.vmem [shape: f32[256,10], index: 11, kind: output, shape index: {}]  }
   0x1 LB: > { %s1555_s18 = sadd.s32 4294967295, %s1905_s17   ;;  %p1559_p0 = scmp.ge.s32.totalorder %s1905_s17, 1  ;;  %s1905_s17 = sphi %s1967_s17, %s21_s17  }
   0x2   : > { %p360_p1 = scmp.lt.s32.totalorder %s1905_s17, 3 }
   0x4   : > { %p361_p2 = pnand %p1559_p0, %p360_p1 }
   0x5   : > { %s1560_s21 = sshll.u32 (!%p361_p2), %s1555_s18, 4 }
   0x6   : > { %364 = sbr.rel (%p361_p2) target bundleno = 710 (0x2c6), region = 64  ;;  %p411_p3 = scmp.lt.s32.totalorder (!%p361_p2), %s1560_s21, 31 }
   0xb   : > { %v485_v0 = vld [vmem:[%s2193_s4] sm:$0xf]  ;;  %vm551_vm0 = vcmask 1043456   ;;  %s2202_s21 = smov (!%p411_p3, %s1560_s21), 31  ;;  %vm526_vm1 = vcmask 64512   ;;  %vm698_vm2 = vcmask 130048  }
   0xc   : > { %v1806_v1 = vld [vmem:[%s2192_s3] sm:$0xff]   ;;  %1794 = vmatprep.subr.msk.bf16.mxu1 %vm551_vm0, %v485_v0  ;;  %1793 = vmatprep.subr.msk.bf16.mxu0 %vm551_vm0, %v485_v0  ;;  %v553_v2 = vsel %vm551_vm0, %v485_v0, 0  ;;  %s1561_s26 = sshll.u32 %s2202_s21, 2  ;;  %v1829_v29 = vld [vmem:[%s2196_s7 + $0x18] sm:$0xff]   ;;  %v1830_v30 = vld [vmem:[%s2196_s7 + $0x10] sm:$0xff]   ;;  %vm1087_vm3 = vcmask 523264  }
   0xd   : > { %1792 = vmatpush3.bf16.msra.mxu1 %v553_v2  ;;  %1694 = vmatpush3.bf16.msra.mxu0 %v553_v2  ;;  %v820_v3 = vld [vmem:[%s2194_s5] sm:$0xf]  ;;  %s420_s29 = scalar_lea.vmem %s2190_s1, %s1561_s26  ;;  %s2002_s13 = scalar_lea.vmem %s2191_s2, %s1561_s26  ;;  %v1831_v31 = vld [vmem:[%s2196_s7 + $0x8] sm:$0xff]   ;;  %vm1256_vm4 = vcmask 261120   ;;  %vm1458_vm5 = vcmask 80896  }
   0xe   : > { %1711 = vmatprep.subr.bf16.mxu1 %v1806_v1  ;;  %1795 = vmatprep.subr.msk.bf16.mxu0 %vm551_vm0, %v820_v3  ;;  %v1804_v4 = vld [vmem:[%s420_s29] sm:$0xff]   ;;  %v1807_v6 = vld [vmem:[%s420_s29 + $0x8] sm:$0xff]   ;;  %v886_v7 = vsel %vm551_vm0, %v820_v3, 0  ;;  %v1809_v9 = vld [vmem:[%s420_s29 + $0x10] sm:$0xff]   ;;  %s2008_s16 = scalar_lea.vmem %s2189_s0, %s1561_s26  ;;  %s1567_s19 = sshll.u32 %s2202_s21, 3 }
   0xf   : > { %v1805_v5 = vld [vmem:[%s420_s29 + $0x20] sm:$0xff]   ;;  %1695 = vmatprep.mubr.msk.bf16.mxu0 %vm526_vm1, %v1804_v4  ;;  %v1808_v8 = vld [vmem:[%s420_s29 + $0x28] sm:$0xff]   ;;  %v1810_v10 = vld [vmem:[%s420_s29 + $0x30] sm:$0xff]   ;;  %s2152_s23 = scalar_lea.vmem %s2200_s11, %s1567_s19 }
  0x10   : > { %1703 = vmatprep.mubr.msk.bf16.mxu1 %vm526_vm1, %v1805_v5  ;;  %1696 = vmatmul.mubr.msk.bf16.vlgmr.msra.gmra.mxu0 %vm526_vm1, %v1807_v6  ;;  %v1811_v11 = vld [vmem:[%s420_s29 + $0x18] sm:$0xff]   ;;  %v1814_v13 = vld [vmem:[%s2002_s13] sm:$0xff]   ;;  %v1815_v15 = vld [vmem:[%s2008_s16 + $0x8] sm:$0xff]  }
  0x11   : > { %1704 = vmatmul.mubr.msk.bf16.vlgmr.msra.gmra.mxu1 %vm526_vm1, %v1808_v8  ;;  %1730 = vmatpush3.bf16.msra.mxu0 %v886_v7  ;;  %v1812_v12 = vld [vmem:[%s420_s29 + $0x38] sm:$0xff]   ;;  %v1813_v14 = vld [vmem:[%s2008_s16] sm:$0xff]   ;;  %v1816_v16 = vld [vmem:[%s2002_s13 + $0x8] sm:$0xff]  }
  0x12   : > { %1712 = vmatpush3.bf16.msra.mxu1 %v1806_v1  ;;  %1699 = vmatprep.mubr.msk.bf16.mxu0 %vm526_vm1, %v1809_v9  ;;  %v1818_v17 = vld [vmem:[%s2002_s13 + $0x10] sm:$0xff]   ;;  %v1820_v19 = vld [vmem:[%s2002_s13 + $0x18] sm:$0xff]   ;;  %v1822_v21 = vld [vmem:[%s2002_s13 + $0x20] sm:$0xff]  }
  0x13   : > { %1707 = vmatprep.mubr.msk.bf16.mxu1 %vm526_vm1, %v1810_v10  ;;  %v1817_v18 = vld [vmem:[%s2008_s16 + $0x10] sm:$0xff]   ;;  %v1819_v20 = vld [vmem:[%s2008_s16 + $0x18] sm:$0xff]   ;;  %v1821_v22 = vld [vmem:[%s2008_s16 + $0x20] sm:$0xff]   ;;  %1747 = vmatprep.subr.bf16.mxu1 %v1829_v29 }
  0x14   : > { %v1824_v23 = vld [vmem:[%s2002_s13 + $0x28] sm:$0xff]   ;;  %v1826_v25 = vld [vmem:[%s2002_s13 + $0x30] sm:$0xff]   ;;  %v1828_v27 = vld [vmem:[%s2002_s13 + $0x38] sm:$0xff]  }
  0x15   : > { %v1823_v24 = vld [vmem:[%s2008_s16 + $0x28] sm:$0xff]   ;;  %v1825_v26 = vld [vmem:[%s2008_s16 + $0x30] sm:$0xff]   ;;  %v1827_v28 = vld [vmem:[%s2008_s16 + $0x38] sm:$0xff]  }
  0x16   : > { %v1832_v32 = vld [vmem:[%s2196_s7] sm:$0xff]   ;;  %v1833_v33 = vld [vmem:[%s2198_s9 + $0x8] sm:$0xff]  }
  0x17   : > { %v1834_v34 = vld [vmem:[%s2198_s9] sm:$0xff]   ;;  %1771 = vmatprep.subr.bf16.mxu0 %v1833_v33 }
  0x18   : > { %1700 = vmatmul.mubr.msk.bf16.gmra.mxu0 %vm526_vm1, %v1811_v11  ;;  %v2082_v0 = vld [vmem:[%s2195_s6] ss:$0 sm:$0xff] }
  0x19   : > { %1708 = vmatmul.mubr.msk.bf16.gmra.mxu1 %vm526_vm1, %v1812_v12  ;;  %1731 = vmatprep.mubr.msk.bf16.mxu0 %vm526_vm1, %v1814_v13 }
  0x1a   : > { %1713 = vmatprep.mubr.msk.bf16.mxu1 %vm698_vm2, %v1813_v14 }
  0x20   : > { %1732 = vmatmul.mubr.msk.bf16.vlgmr.msra.gmra.mxu0 %vm526_vm1, %v1816_v16 }
  0x21   : > { %1714 = vmatmul.mubr.msk.bf16.vlgmr.msra.gmra.mxu1 %vm698_vm2, %v1815_v15  ;;  %1735 = vmatprep.mubr.msk.bf16.mxu0 %vm526_vm1, %v1818_v17 }
  0x22   : > { %1717 = vmatprep.mubr.msk.bf16.mxu1 %vm698_vm2, %v1817_v18  ;;  %1748 = vmatpush3.bf16.msra.mxu1 %v1829_v29 }
  0x23   : > { %1749 = vmatprep.subr.bf16.mxu1 %v1830_v30  ;;  %1772 = vmatpush3.bf16.msra.mxu0 %v1833_v33 }
  0x24   : > { %1773 = vmatprep.subr.bf16.mxu0 %v1834_v34 }
  0x26   : > { %1750 = vmatpush3.bf16.msra.mxu1 %v1830_v30 }
  0x27   : > { %1751 = vmatprep.subr.bf16.mxu1 %v1831_v31  ;;  %1774 = vmatpush3.bf16.msra.mxu0 %v1834_v34 }
  0x28   : > { %1736 = vmatmul.mubr.msk.bf16.gmra.mxu0 %vm526_vm1, %v1820_v19 }
  0x29   : > { %1718 = vmatmul.mubr.msk.bf16.gmra.mxu1 %vm698_vm2, %v1819_v20  ;;  %1739 = vmatprep.mubr.msk.bf16.mxu0 %vm526_vm1, %v1822_v21 }
  0x2a   : > { %1721 = vmatprep.mubr.msk.bf16.mxu1 %vm698_vm2, %v1821_v22  ;;  %1752 = vmatpush3.bf16.msra.mxu1 %v1831_v31 }
  0x2b   : > { %1753 = vmatprep.subr.bf16.mxu1 %v1832_v32 }
  0x2e   : > { %1754 = vmatpush3.bf16.msra.mxu1 %v1832_v32 }
  0x30   : > { %1740 = vmatmul.mubr.msk.bf16.gmra.mxu0 %vm526_vm1, %v1824_v23 }
  0x31   : > { %1722 = vmatmul.mubr.msk.bf16.gmra.mxu1 %vm698_vm2, %v1823_v24  ;;  %1743 = vmatprep.mubr.msk.bf16.mxu0 %vm526_vm1, %v1826_v25 }
  0x32   : > { %1725 = vmatprep.mubr.msk.bf16.mxu1 %vm698_vm2, %v1825_v26 }
  0x38   : > { %1744 = vmatmul.mubr.msk.bf16.gmra.mxu0 %vm526_vm1, %v1828_v27 }
  0x39   : > { %1726 = vmatmul.mubr.msk.bf16.gmra.mxu1 %vm698_vm2, %v1827_v28 }
  0xd0   : > { %v1697_v35 = vpop.f32.mrf.mxu0 }
  0xd1   : > { %v2063_v36 = vpop.f32.mrf.mxu1 }
  0xd2   : > { %v589_v37 = vpop.f32.mrf.mxu0 }
  0xd3   : > { %v2065_v38 = vpop.f32.mrf.mxu1 }
  0xd4   : > { %v1698_v39 = vpop.f32.mrf.mxu0 }
  0xd5   : > { %v2067_v40 = vpop.f32.mrf.mxu1 }
  0xd6   : > { %v592_v41 = vpop.f32.mrf.mxu0 }
  0xd7   : > { %v2069_v42 = vpop.f32.mrf.mxu1 }
  0xd8   : > { %v1701_v43 = vpop.f32.mrf.mxu0 }
  0xd9   : > { %v2071_v44 = vpop.f32.mrf.mxu1 }
  0xda   : > { %v605_v45 = vpop.f32.mrf.mxu0 }
  0xdb   : > { %v2073_v46 = vpop.f32.mrf.mxu1 }
  0xdc   : > { %v1702_v47 = vpop.f32.mrf.mxu0 }
  0xdd   : > { %v2075_v48 = vpop.f32.mrf.mxu1 }
  0xde   : > { %v608_v49 = vpop.f32.mrf.mxu0 }
  0xdf   : > { %v2077_v50 = vpop.f32.mrf.mxu1 }
  0xe0   : > { %v1733_v51 = vpop.f32.mrf.mxu0 }
  0xe1   : > { %v1715_v52 = vpop.f32.mrf.mxu1 }
  0xe2   : > { %v922_v53 = vpop.f32.mrf.mxu0  ;;  %v766_v54 = vadd.f32 %v1715_v52, %v1697_v35 }
  0xe3   : > { %v757_v55 = vpop.f32.mrf.mxu1 }
  0xe4   : > { %v758_v56 = vadd.f32 %v757_v55, %v589_v37  ;;  %v1734_v57 = vpop.f32.mrf.mxu0  ;;  %v987_v62 = vadd.f32 %v1733_v51, %v766_v54 }
  0xe5   : > { %v1716_v58 = vpop.f32.mrf.mxu1 }
  0xe6   : > { %v985_v59 = vadd.f32 %v922_v53, %v758_v56  ;;  %v769_v60 = vadd.f32 %v1716_v58, %v1698_v39  ;;  %v925_v61 = vpop.f32.mrf.mxu0  ;;  %v1010_v9 = vadd.f32 %v2082_v0, %v987_v62 }
  0xe7   : > { %v760_v63 = vpop.f32.mrf.mxu1 }
  0xe8   : > { %v988_v1 = vadd.f32 %v1734_v57, %v769_v60  ;;  %v761_v2 = vadd.f32 %v760_v63, %v592_v41  ;;  %v1737_v3 = vpop.f32.mrf.mxu0  ;;  %v1008_v5 = vadd.f32 %v2082_v0, %v985_v59  ;;  %v1026_v21 = vmax.f32 %v1010_v9, 0.0 }
  0xe9   : > { %v1719_v4 = vpop.f32.mrf.mxu1 }
  0xea   : > { %v1011_v6 = vadd.f32 %v2082_v0, %v988_v1  ;;  %v986_v7 = vadd.f32 %v925_v61, %v761_v2  ;;  %v938_v8 = vpop.f32.mrf.mxu0  ;;  %v782_v10 = vadd.f32 %v1719_v4, %v1701_v43  ;;  %v1024_v17 = vmax.f32 %v1008_v5, 0.0 }
  0xeb   : > { %v773_v11 = vpop.f32.mrf.mxu1 }
  0xec   : > { %v1009_v12 = vadd.f32 %v2082_v0, %v986_v7  ;;  %v774_v13 = vadd.f32 %v773_v11, %v605_v45  ;;  %v1738_v14 = vpop.f32.mrf.mxu0  ;;  %v1027_v15 = vmax.f32 %v1011_v6, 0.0  ;;  %v991_v22 = vadd.f32 %v1737_v3, %v782_v10 }
  0xed   : > { %v1720_v16 = vpop.f32.mrf.mxu1 }
  0xee   : > { %v1025_v18 = vmax.f32 %v1009_v12, 0.0  ;;  %v989_v19 = vadd.f32 %v938_v8, %v774_v13  ;;  %v941_v20 = vpop.f32.mrf.mxu0  ;;  %v785_v23 = vadd.f32 %v1720_v16, %v1702_v47  ;;  %v1041_v28 = vpack.c.bf16 %v1027_v15, %v1026_v21 }
  0xef   : > { %v776_v24 = vpop.f32.mrf.mxu1  ;;  %v1014_v34 = vadd.f32 %v2082_v0, %v991_v22 }
  0xf0   : > { %v1040_v25 = vpack.c.bf16 %v1025_v18, %v1024_v17  ;;  %v777_v26 = vadd.f32 %v776_v24, %v608_v49  ;;  %v1741_v27 = vpop.f32.mrf.mxu0  ;;  %v992_v29 = vadd.f32 %v1738_v14, %v785_v23  ;;  %v1012_v31 = vadd.f32 %v2082_v0, %v989_v19 }
  0xf1   : > { %v1723_v30 = vpop.f32.mrf.mxu1  ;;  %v1030_v55 = vmax.f32 %v1014_v34, 0.0 }
  0xf2   : > { %v990_v32 = vadd.f32 %v941_v20, %v777_v26  ;;  %1755 = vmatprep.mubr.msk.bf16.mxu1 %vm1087_vm3, %v1040_v25  ;;  %v954_v33 = vpop.f32.mrf.mxu0  ;;  %v1015_v35 = vadd.f32 %v2082_v0, %v992_v29  ;;  %v798_v41 = vadd.f32 %v1723_v30, %v2063_v36  ;;  %v1028_v51 = vmax.f32 %v1012_v31, 0.0  ;;  %v1618_v31 = vld [vmem:[%s2197_s8] ss:$0 sm:$0xff] }
  0xf3   : > { %v789_v37 = vpop.f32.mrf.mxu1  ;;  %1756 = vmatmul.mubr.msk.bf16.vlgmr.msra.gmra.mxu1 %vm1087_vm3, %v1041_v28 }
  0xf4   : > { %v1013_v39 = vadd.f32 %v2082_v0, %v990_v32  ;;  %v790_v43 = vadd.f32 %v789_v37, %v2065_v38  ;;  %v1742_v45 = vpop.f32.mrf.mxu0  ;;  %v1031_v47 = vmax.f32 %v1015_v35, 0.0  ;;  %v995_v59 = vadd.f32 %v1741_v27, %v798_v41 }
  0xf5   : > { %v1724_v49 = vpop.f32.mrf.mxu1 }
  0xf6   : > { %v1029_v52 = vmax.f32 %v1013_v39, 0.0  ;;  %v801_v53 = vadd.f32 %v1724_v49, %v2067_v40  ;;  %v957_v54 = vpop.f32.mrf.mxu0  ;;  %v993_v56 = vadd.f32 %v954_v33, %v790_v43  ;;  %v1043_v62 = vpack.c.bf16 %v1031_v47, %v1030_v55 }
  0xf7   : > { %v792_v57 = vpop.f32.mrf.mxu1  ;;  %v1018_v4 = vadd.f32 %v2082_v0, %v995_v59 }
  0xf8   : > { %v1042_v58 = vpack.c.bf16 %v1029_v52, %v1028_v51  ;;  %v996_v60 = vadd.f32 %v1742_v45, %v801_v53  ;;  %v1745_v61 = vpop.f32.mrf.mxu0  ;;  %v793_v36 = vadd.f32 %v792_v57, %v2069_v42  ;;  %v1016_v2 = vadd.f32 %v2082_v0, %v993_v56 }
  0xf9   : > { %v1727_v63 = vpop.f32.mrf.mxu1  ;;  %v1034_v15 = vmax.f32 %v1018_v4, 0.0 }
  0xfa   : > { %v1019_v38 = vadd.f32 %v2082_v0, %v996_v60  ;;  %1759 = vmatprep.mubr.msk.bf16.mxu1 %vm1087_vm3, %v1042_v58  ;;  %v970_v1 = vpop.f32.mrf.mxu0  ;;  %v994_v40 = vadd.f32 %v957_v54, %v793_v36  ;;  %v814_v5 = vadd.f32 %v1727_v63, %v2071_v44  ;;  %v1032_v12 = vmax.f32 %v1016_v2, 0.0 }
  0xfb   : > { %v805_v3 = vpop.f32.mrf.mxu1  ;;  %1760 = vmatmul.mubr.msk.bf16.gmra.mxu1 %vm1087_vm3, %v1043_v62 }
  0xfc   : > { %v806_v6 = vadd.f32 %v805_v3, %v2073_v46  ;;  %v1017_v42 = vadd.f32 %v2082_v0, %v994_v40  ;;  %v1746_v8 = vpop.f32.mrf.mxu0  ;;  %v1035_v9 = vmax.f32 %v1019_v38, 0.0  ;;  %v999_v16 = vadd.f32 %v1745_v61, %v814_v5 }
  0xfd   : > { %v1728_v7 = vpop.f32.mrf.mxu1 }
  0xfe   : > { %v997_v10 = vadd.f32 %v970_v1, %v806_v6  ;;  %v817_v11 = vadd.f32 %v1728_v7, %v2075_v48  ;;  %v1033_v13 = vmax.f32 %v1017_v42, 0.0  ;;  %v973_v44 = vpop.f32.mrf.mxu0  ;;  %v1045_v20 = vpack.c.bf16 %v1035_v9, %v1034_v15 }
  0xff   : > { %v808_v14 = vpop.f32.mrf.mxu1  ;;  %v1022_v48 = vadd.f32 %v2082_v0, %v999_v16 }
 0x100   : > { %v1000_v17 = vadd.f32 %v1746_v8, %v817_v11  ;;  %v809_v18 = vadd.f32 %v808_v14, %v2077_v50  ;;  %v1044_v19 = vpack.c.bf16 %v1033_v13, %v1032_v12  ;;  %v1020_v46 = vadd.f32 %v2082_v0, %v997_v10 }
 0x101   : > { %v1038_v50 = vmax.f32 %v1022_v48, 0.0 }
 0x102   : > { %v1023_v21 = vadd.f32 %v2082_v0, %v1000_v17  ;;  %v998_v22 = vadd.f32 %v973_v44, %v809_v18  ;;  %1763 = vmatprep.mubr.msk.bf16.mxu1 %vm1087_vm3, %v1044_v19  ;;  %v1036_v24 = vmax.f32 %v1020_v46, 0.0 }
 0x103   : > { %1764 = vmatmul.mubr.msk.bf16.gmra.mxu1 %vm1087_vm3, %v1045_v20 }
 0x104   : > { %v1021_v23 = vadd.f32 %v2082_v0, %v998_v22  ;;  %v1039_v25 = vmax.f32 %v1023_v21, 0.0 }
 0x106   : > { %v1037_v26 = vmax.f32 %v1021_v23, 0.0  ;;  %v1047_v28 = vpack.c.bf16 %v1039_v25, %v1038_v50  ;;  %v2130_v23 = vld [vmem:[%s2199_s10] ss:$0 sm:$0xff] }
 0x108   : > { %v1046_v27 = vpack.c.bf16 %v1037_v26, %v1036_v24 }
 0x10a   : > { %1767 = vmatprep.mubr.msk.bf16.mxu1 %vm1087_vm3, %v1046_v27 }
 0x10b   : > { %1768 = vmatmul.mubr.msk.bf16.gmra.mxu1 %vm1087_vm3, %v1047_v28 }
 0x1b3   : > { %v1757_v29 = vpop.f32.mrf.mxu1 }
 0x1b4   : > { %v1155_v34 = vadd.f32 %v1757_v29, %v1618_v31 }
 0x1b5   : > { %v1146_v30 = vpop.f32.mrf.mxu1 }
 0x1b6   : > { %v1147_v0 = vadd.f32 %v1618_v31, %v1146_v30  ;;  %v1211_v47 = vmax.f32 %v1155_v34, 0.0 }
 0x1b7   : > { %v1758_v32 = vpop.f32.mrf.mxu1 }
 0x1b8   : > { %v1158_v33 = vadd.f32 %v1758_v32, %v1618_v31  ;;  %v1209_v43 = vmax.f32 %v1147_v0, 0.0 }
 0x1b9   : > { %v1149_v35 = vpop.f32.mrf.mxu1 }
 0x1ba   : > { %v1150_v37 = vadd.f32 %v1618_v31, %v1149_v35  ;;  %v1212_v39 = vmax.f32 %v1158_v33, 0.0 }
 0x1bb   : > { %v1761_v41 = vpop.f32.mrf.mxu1 }
 0x1bc   : > { %v1210_v45 = vmax.f32 %v1150_v37, 0.0  ;;  %v1226_v52 = vpack.c.bf16 %v1212_v39, %v1211_v47  ;;  %v1171_v56 = vadd.f32 %v1761_v41, %v1618_v31 }
 0x1bd   : > { %v1162_v49 = vpop.f32.mrf.mxu1 }
 0x1be   : > { %v1225_v51 = vpack.c.bf16 %v1210_v45, %v1209_v43  ;;  %v1163_v54 = vadd.f32 %v1618_v31, %v1162_v49  ;;  %v1215_v36 = vmax.f32 %v1171_v56, 0.0 }
 0x1bf   : > { %v1762_v53 = vpop.f32.mrf.mxu1 }
 0x1c0   : > { %v1174_v55 = vadd.f32 %v1762_v53, %v1618_v31  ;;  %1775 = vmatprep.mubr.msk.bf16.mxu0 %vm1256_vm4, %v1225_v51  ;;  %v1213_v60 = vmax.f32 %v1163_v54, 0.0 }
 0x1c1   : > { %v1165_v57 = vpop.f32.mrf.mxu1  ;;  %1776 = vmatmul.mubr.msk.bf16.vlgmr.msra.gmra.mxu0 %vm1256_vm4, %v1226_v52 }
 0x1c2   : > { %v1166_v58 = vadd.f32 %v1618_v31, %v1165_v57  ;;  %v1216_v59 = vmax.f32 %v1174_v55, 0.0 }
 0x1c3   : > { %v1765_v62 = vpop.f32.mrf.mxu1 }
 0x1c4   : > { %v1214_v61 = vmax.f32 %v1166_v58, 0.0  ;;  %v1228_v1 = vpack.c.bf16 %v1216_v59, %v1215_v36  ;;  %v1187_v4 = vadd.f32 %v1765_v62, %v1618_v31 }
 0x1c5   : > { %v1178_v38 = vpop.f32.mrf.mxu1 }
 0x1c6   : > { %v1227_v63 = vpack.c.bf16 %v1214_v61, %v1213_v60  ;;  %v1179_v40 = vadd.f32 %v1618_v31, %v1178_v38  ;;  %v1219_v10 = vmax.f32 %v1187_v4, 0.0 }
 0x1c7   : > { %v1766_v2 = vpop.f32.mrf.mxu1 }
 0x1c8   : > { %1779 = vmatprep.mubr.msk.bf16.mxu0 %vm1256_vm4, %v1227_v63  ;;  %v1190_v3 = vadd.f32 %v1766_v2, %v1618_v31  ;;  %v1217_v8 = vmax.f32 %v1179_v40, 0.0 }
 0x1c9   : > { %1780 = vmatmul.mubr.msk.bf16.gmra.mxu0 %vm1256_vm4, %v1228_v1  ;;  %v1181_v5 = vpop.f32.mrf.mxu1 }
 0x1ca   : > { %v1182_v6 = vadd.f32 %v1618_v31, %v1181_v5  ;;  %v1220_v42 = vmax.f32 %v1190_v3, 0.0 }
 0x1cb   : > { %v1769_v7 = vpop.f32.mrf.mxu1 }
 0x1cc   : > { %v1218_v9 = vmax.f32 %v1182_v6, 0.0  ;;  %v1230_v13 = vpack.c.bf16 %v1220_v42, %v1219_v10  ;;  %v1203_v17 = vadd.f32 %v1769_v7, %v1618_v31 }
 0x1cd   : > { %v1194_v11 = vpop.f32.mrf.mxu1 }
 0x1ce   : > { %v1229_v12 = vpack.c.bf16 %v1218_v9, %v1217_v8  ;;  %v1195_v15 = vadd.f32 %v1618_v31, %v1194_v11  ;;  %v1223_v21 = vmax.f32 %v1203_v17, 0.0 }
 0x1cf   : > { %v1770_v14 = vpop.f32.mrf.mxu1 }
 0x1d0   : > { %v1206_v16 = vadd.f32 %v1770_v14, %v1618_v31  ;;  %1783 = vmatprep.mubr.msk.bf16.mxu0 %vm1256_vm4, %v1229_v12  ;;  %v1221_v20 = vmax.f32 %v1195_v15, 0.0 }
 0x1d1   : > { %v1197_v18 = vpop.f32.mrf.mxu1  ;;  %1784 = vmatmul.mubr.msk.bf16.gmra.mxu0 %vm1256_vm4, %v1230_v13 }
 0x1d2   : > { %v1198_v19 = vadd.f32 %v1618_v31, %v1197_v18  ;;  %v1224_v44 = vmax.f32 %v1206_v16, 0.0 }
 0x1d4   : > { %v1222_v46 = vmax.f32 %v1198_v19, 0.0  ;;  %v1232_v48 = vpack.c.bf16 %v1224_v44, %v1223_v21 }
 0x1d6   : > { %v1231_v22 = vpack.c.bf16 %v1222_v46, %v1221_v20 }
 0x1d8   : > { %1787 = vmatprep.mubr.msk.bf16.mxu0 %vm1256_vm4, %v1231_v22 }
 0x1d9   : > { %1788 = vmatmul.mubr.msk.bf16.gmra.mxu0 %vm1256_vm4, %v1232_v48 }
 0x281   : > { %v1777_v24 = vpop.f32.mrf.mxu0 }
 0x282   : > { %v1324_v25 = vadd.f32 %v1777_v24, %v2130_v23 }
 0x283   : > { %v1315_v26 = vpop.f32.mrf.mxu0 }
 0x284   : > { %v1380_v50 = vsub.f32 0.0, %v1324_v25  ;;  %v1316_v27 = vadd.f32 %v2130_v23, %v1315_v26 }
 0x285   : > { %v1778_v28 = vpop.f32.mrf.mxu0 }
 0x286   : > { %v1398_v29 = vmul.f32 1.442695, %v1380_v50  ;;  %v1378_v30 = vsub.f32 0.0, %v1316_v27  ;;  %v1327_v31 = vadd.f32 %v1778_v28, %v2130_v23 }
 0x287   : > { %v1318_v32 = vpop.f32.mrf.mxu0 }
 0x288   : > { %1835 = vpow2.f32 %v1398_v29  ;;  %v1394_v0 = vmul.f32 1.442695, %v1378_v30  ;;  %v1381_v33 = vsub.f32 0.0, %v1327_v31  ;;  %v1319_v34 = vadd.f32 %v2130_v23, %v1318_v32 }
 0x289   : > { %v1781_v35 = vpop.f32.mrf.mxu0 }
 0x28a   : > { %1837 = vpow2.f32 %v1394_v0  ;;  %v1400_v37 = vmul.f32 1.442695, %v1381_v33  ;;  %v1379_v39 = vsub.f32 0.0, %v1319_v34  ;;  %v1340_v41 = vadd.f32 %v1781_v35, %v2130_v23 }
 0x28b   : > { %v1331_v43 = vpop.f32.mrf.mxu0 }
 0x28c   : > { %1839 = vpow2.f32 %v1400_v37  ;;  %v1396_v45 = vmul.f32 1.442695, %v1379_v39  ;;  %v1384_v47 = vsub.f32 0.0, %v1340_v41  ;;  %v1332_v49 = vadd.f32 %v2130_v23, %v1331_v43 }
 0x28d   : > { %v1782_v51 = vpop.f32.mrf.mxu0 }
 0x28e   : > { %1841 = vpow2.f32 %v1396_v45  ;;  %v1406_v52 = vmul.f32 1.442695, %v1384_v47  ;;  %v1382_v53 = vsub.f32 0.0, %v1332_v49  ;;  %v1343_v54 = vadd.f32 %v1782_v51, %v2130_v23 }
 0x28f   : > { %v1334_v55 = vpop.f32.mrf.mxu0 }
 0x290   : > { %1843 = vpow2.f32 %v1406_v52  ;;  %v1402_v56 = vmul.f32 1.442695, %v1382_v53  ;;  %v1385_v57 = vsub.f32 0.0, %v1343_v54  ;;  %v1335_v58 = vadd.f32 %v2130_v23, %v1334_v55 }
 0x291   : > { %v1785_v61 = vpop.f32.mrf.mxu0 }
 0x292   : > { %1845 = vpow2.f32 %v1402_v56  ;;  %v1408_v59 = vmul.f32 1.442695, %v1385_v57  ;;  %v1383_v60 = vsub.f32 0.0, %v1335_v58  ;;  %v1356_v62 = vadd.f32 %v1785_v61, %v2130_v23 }
 0x293   : > { %v1347_v63 = vpop.f32.mrf.mxu0 }
 0x294   : > { %1847 = vpow2.f32 %v1408_v59  ;;  %v1404_v36 = vmul.f32 1.442695, %v1383_v60  ;;  %v1388_v1 = vsub.f32 0.0, %v1356_v62  ;;  %v1348_v2 = vadd.f32 %v2130_v23, %v1347_v63 }
 0x295   : > { %v1836_v38 = vpop.eup %1835  ;;  %v1786_v3 = vpop.f32.mrf.mxu0 }
 0x296   : > { %v1428_v40 = vadd.f32 1.0, %v1836_v38  ;;  %1849 = vpow2.f32 %v1404_v36  ;;  %v1414_v5 = vmul.f32 1.442695, %v1388_v1  ;;  %v1386_v6 = vsub.f32 0.0, %v1348_v2 }
 0x297   : > { %v1838_v4 = vpop.eup %1837  ;;  %v1359_v42 = vadd.f32 %v1786_v3, %v2130_v23  ;;  %v1350_v8 = vpop.f32.mrf.mxu0 }
 0x298   : > { %1851 = vrcp.f32 %v1428_v40  ;;  %v1426_v7 = vadd.f32 1.0, %v1838_v4  ;;  %v1410_v10 = vmul.f32 1.442695, %v1386_v6  ;;  %v1351_v12 = vadd.f32 %v2130_v23, %v1350_v8 }
 0x299   : > { %v1840_v9 = vpop.eup %1839  ;;  %1853 = vpow2.f32 %v1414_v5  ;;  %v1389_v11 = vsub.f32 0.0, %v1359_v42  ;;  %v1789_v14 = vpop.f32.mrf.mxu0 }
 0x29a   : > { %1855 = vrcp.f32 %v1426_v7  ;;  %v1429_v13 = vadd.f32 1.0, %v1840_v9  ;;  %v1387_v17 = vsub.f32 0.0, %v1351_v12  ;;  %v1372_v18 = vadd.f32 %v1789_v14, %v2130_v23 }
 0x29b   : > { %v1842_v15 = vpop.eup %1841  ;;  %1857 = vpow2.f32 %v1410_v10  ;;  %v1416_v16 = vmul.f32 1.442695, %v1389_v11  ;;  %v1363_v44 = vpop.f32.mrf.mxu0 }
 0x29c   : > { %1859 = vrcp.f32 %v1429_v13  ;;  %v1427_v19 = vadd.f32 1.0, %v1842_v15  ;;  %v1412_v46 = vmul.f32 1.442695, %v1387_v17  ;;  %v1392_v21 = vsub.f32 0.0, %v1372_v18 }
 0x29d   : > { %v1844_v20 = vpop.eup %1843  ;;  %1861 = vpow2.f32 %v1416_v16  ;;  %v1364_v22 = vadd.f32 %v2130_v23, %v1363_v44  ;;  %v1790_v24 = vpop.f32.mrf.mxu0 }
 0x29e   : > { %1863 = vrcp.f32 %v1427_v19  ;;  %v1432_v48 = vadd.f32 1.0, %v1844_v20  ;;  %v1422_v26 = vmul.f32 1.442695, %v1392_v21  ;;  %v1375_v27 = vadd.f32 %v1790_v24, %v2130_v23 }
 0x29f   : > { %v1846_v25 = vpop.eup %1845  ;;  %1865 = vpow2.f32 %v1412_v46  ;;  %v1390_v50 = vsub.f32 0.0, %v1364_v22  ;;  %v1366_v29 = vpop.f32.mrf.mxu0 }
 0x2a0   : > { %1867 = vrcp.f32 %v1432_v48  ;;  %v1430_v28 = vadd.f32 1.0, %v1846_v25  ;;  %v1393_v32 = vsub.f32 0.0, %v1375_v27  ;;  %v1367_v0 = vadd.f32 %v2130_v23, %v1366_v29 }
 0x2a1   : > { %v1848_v30 = vpop.eup %1847  ;;  %1869 = vpow2.f32 %v1422_v26  ;;  %v1418_v31 = vmul.f32 1.442695, %v1390_v50 }
 0x2a2   : > { %1871 = vrcp.f32 %v1430_v28  ;;  %v1433_v33 = vadd.f32 1.0, %v1848_v30  ;;  %v1424_v35 = vmul.f32 1.442695, %v1393_v32  ;;  %v1391_v37 = vsub.f32 0.0, %v1367_v0 }
 0x2a3   : > { %v1850_v34 = vpop.eup %1849  ;;  %1873 = vpow2.f32 %v1418_v31 }
 0x2a4   : > { %1875 = vrcp.f32 %v1433_v33  ;;  %v1431_v39 = vadd.f32 1.0, %v1850_v34  ;;  %v1420_v23 = vmul.f32 1.442695, %v1391_v37 }
 0x2a5   : > { %v1852_v41 = vpop.eup %1851  ;;  %1877 = vpow2.f32 %v1424_v35 }
 0x2a6   : > { %v1854_v43 = vpop.eup %1853  ;;  %1461 = vst.msk [vmem:[%s2152_s23 + $0x10] sm:$0xff] %vm1458_vm5, %v1852_v41  ;;  %1879 = vrcp.f32 %v1431_v39 }
 0x2a7   : > { %v1856_v45 = vpop.eup %1855  ;;  %v1436_v47 = vadd.f32 1.0, %v1854_v43  ;;  %1881 = vpow2.f32 %v1420_v23 }
 0x2a8   : > { %v1858_v49 = vpop.eup %1857  ;;  %1459 = vst.msk [vmem:[%s2152_s23] sm:$0xff] %vm1458_vm5, %v1856_v45 }
 0x2a9   : > { %v1860_v51 = vpop.eup %1859  ;;  %1883 = vrcp.f32 %v1436_v47  ;;  %v1434_v52 = vadd.f32 1.0, %v1858_v49 }
 0x2aa   : > { %v1862_v53 = vpop.eup %1861  ;;  %1462 = vst.msk [vmem:[%s2152_s23 + $0x18] sm:$0xff] %vm1458_vm5, %v1860_v51 }
 0x2ab   : > { %v1864_v54 = vpop.eup %1863  ;;  %1885 = vrcp.f32 %v1434_v52  ;;  %v1437_v55 = vadd.f32 1.0, %v1862_v53 }
 0x2ac   : > { %v1866_v56 = vpop.eup %1865  ;;  %1460 = vst.msk [vmem:[%s2152_s23 + $0x8] sm:$0xff] %vm1458_vm5, %v1864_v54 }
 0x2ad   : > { %v1868_v57 = vpop.eup %1867  ;;  %1887 = vrcp.f32 %v1437_v55  ;;  %v1435_v58 = vadd.f32 1.0, %v1866_v56 }
 0x2ae   : > { %v1870_v59 = vpop.eup %1869  ;;  %1465 = vst.msk [vmem:[%s2152_s23 + $0x30] sm:$0xff] %vm1458_vm5, %v1868_v57 }
 0x2af   : > { %v1872_v60 = vpop.eup %1871  ;;  %1889 = vrcp.f32 %v1435_v58  ;;  %v1440_v61 = vadd.f32 1.0, %v1870_v59 }
 0x2b0   : > { %v1874_v62 = vpop.eup %1873  ;;  %1463 = vst.msk [vmem:[%s2152_s23 + $0x20] sm:$0xff] %vm1458_vm5, %v1872_v60 }
 0x2b1   : > { %v1876_v36 = vpop.eup %1875  ;;  %1891 = vrcp.f32 %v1440_v61  ;;  %v1438_v63 = vadd.f32 1.0, %v1874_v62 }
 0x2b2   : > { %v1878_v38 = vpop.eup %1877  ;;  %1466 = vst.msk [vmem:[%s2152_s23 + $0x38] sm:$0xff] %vm1458_vm5, %v1876_v36 }
 0x2b3   : > { %v1880_v1 = vpop.eup %1879  ;;  %1893 = vrcp.f32 %v1438_v63  ;;  %v1441_v2 = vadd.f32 1.0, %v1878_v38 }
 0x2b4   : > { %v1882_v40 = vpop.eup %1881  ;;  %1464 = vst.msk [vmem:[%s2152_s23 + $0x28] sm:$0xff] %vm1458_vm5, %v1880_v1 }
 0x2b5   : > { %1895 = vrcp.f32 %v1441_v2  ;;  %v1439_v3 = vadd.f32 1.0, %v1882_v40 }
 0x2b6   : > { %v1884_v4 = vpop.eup %1883 }
 0x2b7   : > { %1469 = vst.msk [vmem:[%s2152_s23 + $0x50] sm:$0xff] %vm1458_vm5, %v1884_v4  ;;  %1897 = vrcp.f32 %v1439_v3 }
 0x2b8   : > { %v1886_v5 = vpop.eup %1885 }
 0x2b9   : > { %1467 = vst.msk [vmem:[%s2152_s23 + $0x40] sm:$0xff] %vm1458_vm5, %v1886_v5 }
 0x2ba   : > { %v1888_v6 = vpop.eup %1887 }
 0x2bb   : > { %1470 = vst.msk [vmem:[%s2152_s23 + $0x58] sm:$0xff] %vm1458_vm5, %v1888_v6 }
 0x2bc   : > { %v1890_v42 = vpop.eup %1889 }
 0x2bd   : > { %1468 = vst.msk [vmem:[%s2152_s23 + $0x48] sm:$0xff] %vm1458_vm5, %v1890_v42 }
 0x2be   : > { %v1892_v7 = vpop.eup %1891 }
 0x2bf   : > { %1473 = vst.msk [vmem:[%s2152_s23 + $0x70] sm:$0xff] %vm1458_vm5, %v1892_v7 }
 0x2c0   : > { %v1894_v8 = vpop.eup %1893 }
 0x2c1   : > { %1471 = vst.msk [vmem:[%s2152_s23 + $0x60] sm:$0xff] %vm1458_vm5, %v1894_v8 }
 0x2c2   : > { %v1896_v9 = vpop.eup %1895 }
 0x2c3   : > { %1474 = vst.msk [vmem:[%s2152_s23 + $0x78] sm:$0xff] %vm1458_vm5, %v1896_v9 }
 0x2c4   : > { %v1898_v10 = vpop.eup %1897 }
 0x2c5   : > { %1472 = vst.msk [vmem:[%s2152_s23 + $0x68] sm:$0xff] %vm1458_vm5, %v1898_v10 }
 0x2c6 PF: > { %s21_s17 = sadd.s32 1, %s1905_s17  }
 0x2c7   : > { %p18_p4 = scmp.ge.s32.totalorder %s21_s17, 4  }
 0x2c9   :  { %20 = sbr.rel (!%p18_p4) target bundleno = 1 (0x1), region = 100 }

</bundles_post_ra>
